<compile_context>
chip_gen: v7x
topology: tpu7x:2x2x1
jax: 0.10.0
libtpu: 0.0.40
codegen_flags: <defaults>
</compile_context>

<pallas_src>
import functools

import jax
import jax.numpy as jnp
from jax.experimental import pallas as pl
from jax.experimental.pallas import tpu as pltpu

INPUT_SIZE = 50      # vocab size
HIDDEN_SIZE = 32     # H
OUTPUT_SIZE = 16     # O
N_LAYERS = 1         # kernel implements the single-layer case (module default)
PACK_LANES = 128     # one lane-dense output row: [ relu(dec) | h_new | zero pad ]


def _round_up(x, m):
    return (x + m - 1) // m * m


def gru_decode_kernel(ids_ref, emb_ref, h_ref, gru_ref, dec_ref, out_ref,
                      *, hidden_size, output_size):
    """Embedding gather + single GRU step + packed (decoder | h_new) output.

    ids_ref: SMEM (2,)        int32 token ids
    emb_ref: VMEM (Vpad, H)   embedding table (VMEM-resident, rows read via pl.ds)
    h_ref:   VMEM (1, H)      previous hidden state
    gru_ref: VMEM (112, 3H)   packed [ W_i (2H rows) | W_h (H rows) | b_i | b_h ],
                              gate order r|z|n along lanes, pieces at 8-row offsets
    dec_ref: VMEM (40, 128)   packed [ W_dec.T in lanes 0:O (H rows) | b_dec row ]
    out_ref: VMEM (1, 128)    lanes [0:O] = relu(decoder), lanes [O:O+H] = h_new
    """
    H = hidden_size
    O = output_size
    f32 = jnp.float32
    hi = jax.lax.Precision.HIGHEST

    # Static row offsets inside the packed slabs (all multiples of 8 with H=32).
    off_wh = 2 * H
    off_bi = _round_up(3 * H, 8)
    off_bh = off_bi + 8
    off_bd = _round_up(H, 8)

    # ---- embedding gather: two dynamic-row reads from the VMEM-resident table ----
    tid0 = ids_ref[0]
    tid1 = ids_ref[1]
    e0 = emb_ref[pl.ds(tid0, 1), :]                                   # (1, H)
    e1 = emb_ref[pl.ds(tid1, 1), :]                                   # (1, H)
    h = h_ref[...]                                                    # (1, H)

    # x = [e0 | e1] (1, 2H); gi = x @ W_i + b_i, split to avoid a lane concat.
    gi = (jnp.dot(e0, gru_ref[0:H, :], precision=hi, preferred_element_type=f32)
          + jnp.dot(e1, gru_ref[H:2 * H, :], precision=hi, preferred_element_type=f32)
          + gru_ref[off_bi:off_bi + 1, :])                            # (1, 3H)
    gh = (jnp.dot(h, gru_ref[off_wh:off_wh + H, :], precision=hi,
                  preferred_element_type=f32)
          + gru_ref[off_bh:off_bh + 1, :])                            # (1, 3H)

    r = jax.nn.sigmoid(gi[:, 0:H] + gh[:, 0:H])
    z = jax.nn.sigmoid(gi[:, H:2 * H] + gh[:, H:2 * H])
    n = jnp.tanh(gi[:, 2 * H:3 * H] + r * gh[:, 2 * H:3 * H])
    h_new = (1.0 - z) * n + z * h                                     # (1, H)

    # Decoder: lanes [0:O] = h_new @ W_dec.T + b_dec, lanes [O:] are exactly zero
    # (weights and bias are zero-padded), so ReLU leaves them zero.
    dec = (jnp.dot(h_new, dec_ref[0:H, :], precision=hi, preferred_element_type=f32)
           + dec_ref[off_bd:off_bd + 1, :])                           # (1, 128)

    # Place h_new exactly (no MXU pass-through) into lanes [O:O+H] via lane concat.
    h_shift = jnp.concatenate(
        [jnp.zeros((1, O), f32), h_new, jnp.zeros((1, PACK_LANES - O - H), f32)],
        axis=1)                                                       # (1, 128)

    out_ref[...] = jnp.maximum(dec, 0.0) + h_shift


def init_params(key, input_size=INPUT_SIZE, hidden_size=HIDDEN_SIZE,
                output_size=OUTPUT_SIZE):
    """Deterministic parameter init matching the PyTorch module's shapes."""
    H = hidden_size
    ks = jax.random.split(key, 7)
    scale = 1.0 / jnp.sqrt(jnp.float32(H))
    p = {}
    # nn.Embedding(input_size, H)
    p["embedding"] = jax.random.normal(ks[0], (input_size, H), jnp.float32)
    # nn.GRU(2H, H): weight_ih_l0 (3H, 2H), weight_hh_l0 (3H, H), biases (3H,)
    p["w_ih"] = jax.random.uniform(ks[1], (3 * H, 2 * H), jnp.float32, -scale, scale)
    p["w_hh"] = jax.random.uniform(ks[2], (3 * H, H), jnp.float32, -scale, scale)
    p["b_ih"] = jax.random.uniform(ks[3], (3 * H,), jnp.float32, -scale, scale)
    p["b_hh"] = jax.random.uniform(ks[4], (3 * H,), jnp.float32, -scale, scale)
    # nn.Linear(H, output_size)
    p["w_dec"] = jax.random.uniform(ks[5], (output_size, H), jnp.float32, -scale, scale)
    p["b_dec"] = jax.random.uniform(ks[6], (output_size,), jnp.float32, -scale, scale)
    return p


def prepare_params(params, hidden_size=HIDDEN_SIZE, output_size=OUTPUT_SIZE):
    """One-time kernel-layout packing (no per-call transposes/slices/DMAs)."""
    H, O = hidden_size, output_size
    assert O + H <= PACK_LANES
    f32 = jnp.float32

    # Embedding table, vocab padded to a sublane multiple; stays VMEM-resident.
    emb = params["embedding"].astype(f32)
    v = emb.shape[0]
    emb = jnp.pad(emb, ((0, _round_up(v, 8) - v), (0, 0)))

    # GRU slab: [ W_i (2H,3H) ; W_h (H,3H) ; b_i ; b_h ], pieces at 8-row offsets.
    off_wh = 2 * H
    off_bi = _round_up(3 * H, 8)
    off_bh = off_bi + 8
    gru = jnp.zeros((off_bh + 8, 3 * H), f32)
    gru = gru.at[0:2 * H, :].set(params["w_ih"].T.astype(f32))        # [r|z|n] lanes
    gru = gru.at[off_wh:off_wh + H, :].set(params["w_hh"].T.astype(f32))
    gru = gru.at[off_bi, :].set(params["b_ih"].astype(f32))
    gru = gru.at[off_bh, :].set(params["b_hh"].astype(f32))

    # Decoder slab: [ W_dec.T padded to 128 lanes ; b_dec padded ].
    off_bd = _round_up(H, 8)
    dec = jnp.zeros((off_bd + 8, PACK_LANES), f32)
    dec = dec.at[0:H, 0:O].set(params["w_dec"].T.astype(f32))
    dec = dec.at[off_bd, 0:O].set(params["b_dec"].astype(f32))

    return {"emb": emb, "gru": gru, "dec": dec}


def rnn_forward(token_ids, hidden, prep,
                hidden_size=HIDDEN_SIZE, output_size=OUTPUT_SIZE):
    """Pallas-backed forward. token_ids: (2,) int32; hidden: (n_layers, 1, H)."""
    H, O = hidden_size, output_size
    ids = token_ids.astype(jnp.int32)
    h = hidden.reshape(1, H).astype(jnp.float32)

    vmem = pl.BlockSpec(memory_space=pltpu.MemorySpace.VMEM)
    packed = pl.pallas_call(
        functools.partial(gru_decode_kernel, hidden_size=H, output_size=O),
        out_shape=jax.ShapeDtypeStruct((1, PACK_LANES), jnp.float32),
        in_specs=[
            pl.BlockSpec(memory_space=pltpu.MemorySpace.SMEM),   # token ids
            vmem,                                                # embedding table
            vmem,                                                # previous hidden
            vmem,                                                # packed GRU slab
            vmem,                                                # packed decoder slab
        ],
        out_specs=vmem,
    )(ids, prep["emb"], h, prep["gru"], prep["dec"])

    out = packed[:, 0:O]                                         # (1, O)
    h_new = packed[:, O:O + H].reshape(N_LAYERS, 1, H)           # (n_layers, 1, H)
    return out, h_new


def rnn_forward_ref(token_ids, hidden, params,
                    hidden_size=HIDDEN_SIZE, output_size=OUTPUT_SIZE):
    """Pure-JAX reference of the same forward pass (for verification)."""
    H = hidden_size
    x = jnp.take(params["embedding"], token_ids, axis=0).reshape(1, 2 * H)
    h = hidden.reshape(1, H)
    gi = x @ params["w_ih"].T + params["b_ih"]
    gh = h @ params["w_hh"].T + params["b_hh"]
    i_r, i_z, i_n = gi[:, :H], gi[:, H:2 * H], gi[:, 2 * H:]
    h_r, h_z, h_n = gh[:, :H], gh[:, H:2 * H], gh[:, 2 * H:]
    r = jax.nn.sigmoid(i_r + h_r)
    z = jax.nn.sigmoid(i_z + h_z)
    n = jnp.tanh(i_n + r * h_n)
    h_new = (1.0 - z) * n + z * h
    out = jnp.maximum(h_new @ params["w_dec"].T + params["b_dec"], 0.0)
    return out, h_new.reshape(N_LAYERS, 1, H)


if __name__ == "__main__":
    key = jax.random.PRNGKey(0)
    pkey, ikey = jax.random.split(key)
    params = init_params(pkey)
    prep = prepare_params(params)          # one-time weight re-layout / packing

    # forward() implies exactly 2 token ids (flattened embeddings must equal 2H).
    token_ids = jax.random.randint(ikey, (2,), 0, INPUT_SIZE, dtype=jnp.int32)
    hidden0 = jnp.zeros((N_LAYERS, 1, HIDDEN_SIZE), jnp.float32)   # init_hidden()

    fwd = jax.jit(rnn_forward)
    out, h_new = fwd(token_ids, hidden0, prep)
    out = jax.block_until_ready(out)
    h_new = jax.block_until_ready(h_new)

    out_ref, h_ref = rnn_forward_ref(token_ids, hidden0, params)
    assert out.shape == (1, OUTPUT_SIZE) and h_new.shape == (N_LAYERS, 1, HIDDEN_SIZE)
    assert jnp.allclose(out, out_ref, rtol=1e-5, atol=1e-5)
    assert jnp.allclose(h_new, h_ref, rtol=1e-5, atol=1e-5)

    print("KERNEL_OK")
</pallas_src>

<mosaic_0001>
module attributes {stable_mosaic.version = 11 : i64} {
  func.func @gru_decode_kernel(%arg0: memref<2xi32, #tpu.memory_space<smem>>, %arg1: memref<56x32xf32, #tpu.memory_space<vmem>>, %arg2: memref<1x32xf32, #tpu.memory_space<vmem>>, %arg3: memref<112x96xf32, #tpu.memory_space<vmem>>, %arg4: memref<40x128xf32, #tpu.memory_space<vmem>>, %arg5: memref<1x128xf32, #tpu.memory_space<vmem>>) attributes {dimension_semantics = [], scalar_prefetch = 0 : i64, scratch_operands = 0 : i64, tpu.core_type = #tpu.core_type<tc>} {
    %c0 = arith.constant 0 : index
    %0 = memref.load %arg0[%c0] : memref<2xi32, #tpu.memory_space<smem>>
    %c1 = arith.constant 1 : index
    %1 = memref.load %arg0[%c1] : memref<2xi32, #tpu.memory_space<smem>>
    %2 = arith.index_cast %0 : i32 to index
    %c0_0 = arith.constant 0 : index
    %3 = vector.load %arg1[%2, %c0_0] : memref<56x32xf32, #tpu.memory_space<vmem>>, vector<1x32xf32>
    %4 = arith.index_cast %1 : i32 to index
    %c0_1 = arith.constant 0 : index
    %5 = vector.load %arg1[%4, %c0_1] : memref<56x32xf32, #tpu.memory_space<vmem>>, vector<1x32xf32>
    %c0_2 = arith.constant 0 : index
    %c0_3 = arith.constant 0 : index
    %6 = vector.load %arg2[%c0_2, %c0_3] : memref<1x32xf32, #tpu.memory_space<vmem>>, vector<1x32xf32>
    %c0_4 = arith.constant 0 : index
    %c0_5 = arith.constant 0 : index
    %7 = vector.load %arg3[%c0_4, %c0_5] : memref<112x96xf32, #tpu.memory_space<vmem>>, vector<32x96xf32>
    %cst = arith.constant dense<0.000000e+00> : vector<1x96xf32>
    %8 = tpu.matmul %3, %7, %cst {dimension_numbers = #tpu.dot_dimension_numbers<[1], [0], [0], [1], [0, 0, 1, 1], [], []>, precision = #tpu.contract_precision<fp32>} : vector<1x32xf32>, vector<32x96xf32>, vector<1x96xf32> -> vector<1x96xf32>
    %c32 = arith.constant 32 : index
    %c0_6 = arith.constant 0 : index
    %9 = vector.load %arg3[%c32, %c0_6] : memref<112x96xf32, #tpu.memory_space<vmem>>, vector<32x96xf32>
    %cst_7 = arith.constant dense<0.000000e+00> : vector<1x96xf32>
    %10 = tpu.matmul %5, %9, %cst_7 {dimension_numbers = #tpu.dot_dimension_numbers<[1], [0], [0], [1], [0, 0, 1, 1], [], []>, precision = #tpu.contract_precision<fp32>} : vector<1x32xf32>, vector<32x96xf32>, vector<1x96xf32> -> vector<1x96xf32>
    %11 = arith.addf %8, %10 : vector<1x96xf32>
    %c96 = arith.constant 96 : index
    %c0_8 = arith.constant 0 : index
    %12 = vector.load %arg3[%c96, %c0_8] : memref<112x96xf32, #tpu.memory_space<vmem>>, vector<1x96xf32>
    %13 = arith.addf %11, %12 : vector<1x96xf32>
    %c64 = arith.constant 64 : index
    %c0_9 = arith.constant 0 : index
    %14 = vector.load %arg3[%c64, %c0_9] : memref<112x96xf32, #tpu.memory_space<vmem>>, vector<32x96xf32>
    %cst_10 = arith.constant dense<0.000000e+00> : vector<1x96xf32>
    %15 = tpu.matmul %6, %14, %cst_10 {dimension_numbers = #tpu.dot_dimension_numbers<[1], [0], [0], [1], [0, 0, 1, 1], [], []>, precision = #tpu.contract_precision<fp32>} : vector<1x32xf32>, vector<32x96xf32>, vector<1x96xf32> -> vector<1x96xf32>
    %c104 = arith.constant 104 : index
    %c0_11 = arith.constant 0 : index
    %16 = vector.load %arg3[%c104, %c0_11] : memref<112x96xf32, #tpu.memory_space<vmem>>, vector<1x96xf32>
    %17 = arith.addf %15, %16 : vector<1x96xf32>
    %18 = vector.extract_strided_slice %13 {offsets = [0, 0], sizes = [1, 32], strides = [1, 1]} : vector<1x96xf32> to vector<1x32xf32>
    %19 = vector.extract_strided_slice %17 {offsets = [0, 0], sizes = [1, 32], strides = [1, 1]} : vector<1x96xf32> to vector<1x32xf32>
    %20 = arith.addf %18, %19 : vector<1x32xf32>
    %21 = arith.negf %20 : vector<1x32xf32>
    %22 = math.exp %21 : vector<1x32xf32>
    %cst_12 = arith.constant 1.000000e+00 : f32
    %23 = vector.broadcast %cst_12 : f32 to vector<1x32xf32>
    %24 = arith.addf %23, %22 : vector<1x32xf32>
    %25 = arith.divf %23, %24 : vector<1x32xf32>
    %26 = vector.extract_strided_slice %13 {offsets = [0, 32], sizes = [1, 32], strides = [1, 1]} : vector<1x96xf32> to vector<1x32xf32>
    %27 = vector.extract_strided_slice %17 {offsets = [0, 32], sizes = [1, 32], strides = [1, 1]} : vector<1x96xf32> to vector<1x32xf32>
    %28 = arith.addf %26, %27 : vector<1x32xf32>
    %29 = arith.negf %28 : vector<1x32xf32>
    %30 = math.exp %29 : vector<1x32xf32>
    %cst_13 = arith.constant 1.000000e+00 : f32
    %31 = vector.broadcast %cst_13 : f32 to vector<1x32xf32>
    %32 = arith.addf %31, %30 : vector<1x32xf32>
    %33 = arith.divf %31, %32 : vector<1x32xf32>
    %34 = vector.extract_strided_slice %13 {offsets = [0, 64], sizes = [1, 32], strides = [1, 1]} : vector<1x96xf32> to vector<1x32xf32>
    %35 = vector.extract_strided_slice %17 {offsets = [0, 64], sizes = [1, 32], strides = [1, 1]} : vector<1x96xf32> to vector<1x32xf32>
    %36 = arith.mulf %25, %35 : vector<1x32xf32>
    %37 = arith.addf %34, %36 : vector<1x32xf32>
    %38 = math.tanh %37 : vector<1x32xf32>
    %cst_14 = arith.constant 1.000000e+00 : f32
    %39 = vector.broadcast %cst_14 : f32 to vector<1x32xf32>
    %40 = arith.subf %39, %33 : vector<1x32xf32>
    %41 = arith.mulf %40, %38 : vector<1x32xf32>
    %42 = arith.mulf %33, %6 : vector<1x32xf32>
    %43 = arith.addf %41, %42 : vector<1x32xf32>
    %c0_15 = arith.constant 0 : index
    %c0_16 = arith.constant 0 : index
    %44 = vector.load %arg4[%c0_15, %c0_16] : memref<40x128xf32, #tpu.memory_space<vmem>>, vector<32x128xf32>
    %cst_17 = arith.constant dense<0.000000e+00> : vector<1x128xf32>
    %45 = tpu.matmul %43, %44, %cst_17 {dimension_numbers = #tpu.dot_dimension_numbers<[1], [0], [0], [1], [0, 0, 1, 1], [], []>, precision = #tpu.contract_precision<fp32>} : vector<1x32xf32>, vector<32x128xf32>, vector<1x128xf32> -> vector<1x128xf32>
    %c32_18 = arith.constant 32 : index
    %c0_19 = arith.constant 0 : index
    %46 = vector.load %arg4[%c32_18, %c0_19] : memref<40x128xf32, #tpu.memory_space<vmem>>, vector<1x128xf32>
    %47 = arith.addf %45, %46 : vector<1x128xf32>
    %cst_20 = arith.constant 0.000000e+00 : f32
    %48 = vector.broadcast %cst_20 : f32 to vector<1x16xf32>
    %cst_21 = arith.constant 0.000000e+00 : f32
    %49 = vector.broadcast %cst_21 : f32 to vector<1x80xf32>
    %50 = tpu.concatenate %48, %43, %49 in 1 : vector<1x16xf32>, vector<1x32xf32>, vector<1x80xf32> -> vector<1x128xf32>
    %cst_22 = arith.constant 0.000000e+00 : f32
    %51 = vector.broadcast %cst_22 : f32 to vector<1x128xf32>
    %52 = arith.maximumf %47, %51 : vector<1x128xf32>
    %53 = arith.addf %52, %50 : vector<1x128xf32>
    %c0_23 = arith.constant 0 : index
    %c0_24 = arith.constant 0 : index
    %54 = vector.load %arg5[%c0_23, %c0_24] : memref<1x128xf32, #tpu.memory_space<vmem>>, vector<1x128xf32>
    tpu.vector_store %arg5[%c0_23, %c0_24], %53 {strides = array<i32>} : memref<1x128xf32, #tpu.memory_space<vmem>>, vector<1x128xf32>,
    return
  }
}

</mosaic_0001>

<bundles_post_ra>
// kernel: rnn_forward.1
= control target key start
LH: loop header
LB: loop body
LE: loop exit
PB: predicated region body
PF: predicated region fallthrough
CT: control target
= control target key end

     0   :  { %10 = vsyncpa [#allocation3], 0  ;;  %s2997_s0 = inlined_call_operand.vmem [shape: s32[2], index: 0, kind: input, shape index: {}]   ;;  %s2998_s1 = inlined_call_operand.vmem [shape: f32[56,32], index: 1, kind: input, shape index: {}]   ;;  %s2999_s2 = inlined_call_operand.vmem [shape: f32[1,32], index: 2, kind: input, shape index: {}]   ;;  %s3000_s3 = inlined_call_operand.vmem [shape: f32[112,96], index: 3, kind: input, shape index: {}]   ;;  %s3001_s4 = inlined_call_operand.vmem [shape: f32[40,128], index: 4, kind: input, shape index: {}]   ;;  %s3002_s5 = inlined_call_operand.vmem [shape: f32[1,128], index: 5, kind: output, shape index: {}]  }
   0x1   :  { %s17_s20 = sshll.u32 %s2997_s0, 4  ;;  %s18_s20 = int_to_ptr.vmem [resolvable:$true] %s17_s20 }
   0x2   :  { %s2631_s21 = scalar_lea.vmem %s18_s20, 16  ;;  %p2636_p1 = scmp.lt.s32.totalorder %s18_s20, %s18_s20 }
   0x3   :  { %p2632_p0 = scmp.ne.s32.totalorder %s18_s20, %s2631_s21  ;;  %p2637_p2 = scmp.lt.s32.totalorder %s2631_s21, %s2631_s21 }
   0x5   :  { %p2638_p3 = por %p2637_p2, %p2636_p1 }
   0x7   :  { %p2639_p4 = pnand %p2638_p3, %p2632_p0 }
   0x9   :  { %2642 = shalt.err (!%p2639_p4)
}
   0xa   :  { %s2645_s22 = smov [#allocation2]  }
   0xb   :  { %20 = dma.vmem_to_smem %s18_s20, 16, %s2645_s22, [#allocation3]  }
   0xc   :  { %2643 = dma.done.wait [#allocation3], 16  }
   0xd   :  { %2644 = vsyncadd [#allocation3], 4294967280 }
   0xe   :  { %32 = sfence }
   0xf   :  { %v44_v0 = vld [vmem:[%s3000_s3 + $0x20] sm:$0xff]  ;;  %v45_v1 = vld [vmem:[%s3000_s3 + $0x28] sm:$0xff]  ;;  %v46_v2 = vld [vmem:[%s3000_s3 + $0x30] sm:$0xff]  ;;  %v2646_v3 = vmov 0.0|0.0   ;;  %s2065_s30 = sld [smem:[#allocation2 + $0x1]]  ;;  %vm2647_vm0 = vmmov 0  }
  0x10   :  { %2451 = vmatprep.subr.bf16.mxu0 %v2646_v3  ;;  %v53_v4 = vand.u32 4294901760, %v44_v0  ;;  %v56_v5 = vand.u32 4294901760, %v45_v1  ;;  %2457 = vmatprep.subr.bf16.mxu1 %v2646_v3  ;;  %v47_v6 = vld [vmem:[%s3000_s3 + $0x38] sm:$0xff]  ;;  %v59_v7 = vand.u32 4294901760, %v46_v2  ;;  %v2648_v9 = vmov 0.0   ;;  %s2730_s9 = sld [smem:[#allocation2]] }
  0x11   :  { %v62_v8 = vand.u32 4294901760, %v47_v6  ;;  %2195 = vmatprep.mubr.msk.f32.mxu0 %vm2647_vm0, %v2648_v9  ;;  %2206 = vmatprep.mubr.msk.f32.mxu1 %vm2647_vm0, %v2648_v9  ;;  %vm48_vm1 = vcmask 261120   ;;  %v2740_v29 = vld [vmem:[%s3000_s3] sm:$0xff]  ;;  %v2748_v32 = vld [vmem:[%s3000_s3 + $0x8] sm:$0xff]  ;;  %v2757_v39 = vld [vmem:[%s3000_s3 + $0x10] sm:$0xff]  ;;  %s2652_s17 = smov 112  }
  0x12   :  { %v2704_v10 = vpack.c.bf16 %v56_v5, %v53_v4  ;;  %v2706_v11 = vsub.f32 %v44_v0, %v53_v4  ;;  %v2708_v12 = vsub.f32 %v45_v1, %v56_v5  ;;  %v2710_v13 = vsub.f32 %v46_v2, %v59_v7  ;;  %v2762_v40 = vld [vmem:[%s3000_s3 + $0x18] sm:$0xff] }
  0x13   :  { %v2712_v14 = vsub.f32 %v47_v6, %v62_v8  ;;  %v2717_v17 = vpack.c.bf16 %v62_v8, %v59_v7  ;;  %v541_v35 = vand.u32 4294901760, %v2740_v29  ;;  %v544_v37 = vand.u32 4294901760, %v2748_v32 }
  0x14   :  { %2453 = vmatpush3.bf16.msra.mxu0 %v2704_v10  ;;  %v134_v15 = vand.u32 4294901760, %v2706_v11  ;;  %v141_v16 = vand.u32 4294901760, %v2708_v12  ;;  %v148_v18 = vand.u32 4294901760, %v2710_v13  ;;  %v2464_v43 = vpack.c.bf16 %v2708_v12, %v2706_v11 }
  0x15   :  { %2454 = vmatprep.subr.bf16.mxu0 %v2646_v3  ;;  %v155_v19 = vand.u32 4294901760, %v2712_v14  ;;  %s37_s8 = scalar_lea.vmem %s2998_s1, %s2065_s30  ;;  %v2769_v42 = vsub.f32 %v2740_v29, %v541_v35  ;;  %v2774_v44 = vsub.f32 %v2748_v32, %v544_v37  ;;  %v547_v45 = vand.u32 4294901760, %v2757_v39  ;;  %s2649_s30 = smov 64  }
  0x16   :  { %v135_v20 = vsub.f32 %v2706_v11, %v134_v15  ;;  %v142_v21 = vsub.f32 %v2708_v12, %v141_v16  ;;  %v149_v22 = vsub.f32 %v2710_v13, %v148_v18  ;;  %v38_v24 = vld [vmem:[%s37_s8] sm:$0x1]  ;;  %s35_s20 = scalar_lea.vmem %s2998_s1, %s2730_s9  ;;  %v550_v46 = vand.u32 4294901760, %v2762_v40  ;;  %s2650_s8 = smov 96  }
  0x17   :  { %v156_v23 = vsub.f32 %v2712_v14, %v155_v19  ;;  %v50_v28 = vsel %vm48_vm1, %v38_v24, 0  ;;  %v36_v48 = vld [vmem:[%s35_s20] sm:$0x1]  ;;  %v2467_v49 = vpack.c.bf16 %v2712_v14, %v2710_v13  ;;  %v622_v50 = vand.u32 4294901760, %v2769_v42 }
  0x18   :  { %v136_v25 = vand.u32 4294901760, %v135_v20  ;;  %v143_v26 = vand.u32 4294901760, %v142_v21  ;;  %2456 = vmatpush3.bf16.msra.mxu0 %v2717_v17  ;;  %v150_v27 = vand.u32 4294901760, %v149_v22  ;;  %v2743_v31 = vand.u32 4294901760, %v50_v28  ;;  %v1029_v22 = vld [vmem:[%s3000_s3 + $0x50] sm:$0xff] }
  0x19   :  { %v157_v30 = vand.u32 4294901760, %v156_v23  ;;  %2463 = vmatprep.subr.bf16.mxu0 %v2646_v3  ;;  %v629_v51 = vand.u32 4294901760, %v2774_v44  ;;  %v2786_v52 = vsub.f32 %v2757_v39, %v547_v45  ;;  %v2789_v53 = vsub.f32 %v2762_v40, %v550_v46  ;;  %v1030_v23 = vld [vmem:[%s3000_s3 + $0x58] sm:$0xff] }
  0x1a   :  { %v2458_v33 = vpack.c.bf16 %v143_v26, %v136_v25  ;;  %v122_v34 = vsub.f32 %v50_v28, %v2743_v31  ;;  %v538_v54 = vsel %vm48_vm1, %v36_v48, 0  ;;  %v2476_v55 = vpack.c.bf16 %v141_v16, %v134_v15  ;;  %v1027_v15 = vld [vmem:[%s3000_s3 + $0x40] sm:$0xff]  ;;  %v1028_v16 = vld [vmem:[%s3000_s3 + $0x48] sm:$0xff] }
  0x1b   :  { %v2461_v36 = vpack.c.bf16 %v157_v30, %v150_v27  ;;  %v2798_v56 = vand.u32 4294901760, %v538_v54  ;;  %v623_v57 = vsub.f32 %v2769_v42, %v622_v50  ;;  %v630_v58 = vsub.f32 %v2774_v44, %v629_v51 }
  0x1c   :  { %2459 = vmatpush3.bf16.msra.mxu1 %v2458_v33  ;;  %v123_v38 = vand.u32 4294901760, %v122_v34  ;;  %v636_v59 = vand.u32 4294901760, %v2786_v52  ;;  %v643_v60 = vand.u32 4294901760, %v2789_v53  ;;  %v2479_v61 = vpack.c.bf16 %v155_v19, %v148_v18 }
  0x1d   :  { %2460 = vmatprep.subr.bf16.mxu1 %v2646_v3  ;;  %v2816_v62 = vsub.f32 %v538_v54, %v2798_v56  ;;  %v624_v63 = vand.u32 4294901760, %v623_v57  ;;  %v631_v0 = vand.u32 4294901760, %v630_v58  ;;  %v2488_v5 = vpack.c.bf16 %v544_v37, %v541_v35 }
  0x1e   :  { %v124_v41 = vsub.f32 %v122_v34, %v123_v38  ;;  %v637_v1 = vsub.f32 %v2786_v52, %v636_v59  ;;  %v644_v2 = vsub.f32 %v2789_v53, %v643_v60  ;;  %v2491_v11 = vpack.c.bf16 %v550_v46, %v547_v45 }
  0x1f   :  { %v611_v4 = vand.u32 4294901760, %v2816_v62  ;;  %v2494_v6 = vpack.c.bf16 %v631_v0, %v624_v63  ;;  %v2500_v14 = vpack.c.bf16 %v2774_v44, %v2769_v42  ;;  %v2503_v18 = vpack.c.bf16 %v2789_v53, %v2786_v52 }
  0x20   :  { %2462 = vmatpush3.bf16.msra.mxu1 %v2461_v36  ;;  %v125_v47 = vand.u32 4294901760, %v124_v41  ;;  %v638_v7 = vand.u32 4294901760, %v637_v1  ;;  %v645_v8 = vand.u32 4294901760, %v644_v2  ;;  %v1036_v19 = vand.u32 4294901760, %v1027_v15 }
  0x21   :  { %2469 = vmatprep.subr.bf16.mxu1 %v2646_v3  ;;  %v1039_v20 = vand.u32 4294901760, %v1028_v16  ;;  %v2512_v24 = vpack.c.bf16 %v629_v51, %v622_v50  ;;  %v1042_v28 = vand.u32 4294901760, %v1029_v22  ;;  %v1045_v29 = vand.u32 4294901760, %v1030_v23 }
  0x22   :  { %2196 = vmatmul.mubr.f32.vlgmr.msra.gmra.mrb[0].mxu0 %v125_v47  ;;  %v2497_v12 = vpack.c.bf16 %v645_v8, %v638_v7  ;;  %v2882_v26 = vsub.f32 %v1027_v15, %v1036_v19  ;;  %v2515_v30 = vpack.c.bf16 %v643_v60, %v636_v59  ;;  %vm2051_vm2 = vcmask 130048  }
  0x23   :  { %2207 = vmatmul.mubr.f32.vlgmr.msra.gmra.mrb[0].mxu1 %v2743_v31  ;;  %2465 = vmatpush3.bf16.msra.mxu0 %v2464_v43  ;;  %v2884_v27 = vsub.f32 %v1028_v16, %v1039_v20  ;;  %v1130_v32 = vsub.f32 %v1029_v22, %v1042_v28  ;;  %v1137_v33 = vsub.f32 %v1030_v23, %v1045_v29  ;;  %vm2053_vm3 = vcmask 392192  }
  0x24   :  { %2471 = vmatpush3.bf16.msra.mxu1 %v2704_v10  ;;  %2466 = vmatprep.subr.bf16.mxu0 %v2646_v3  ;;  %v2524_v36 = vpack.c.bf16 %v1039_v20, %v1036_v19  ;;  %v2527_v42 = vpack.c.bf16 %v1045_v29, %v1042_v28 }
  0x25   :  { %2472 = vmatprep.subr.bf16.mxu1 %v2646_v3  ;;  %2217 = vmatprep.mubr.msk.f32.mxu0 %vm2647_vm0, %v2648_v9  ;;  %v1124_v35 = vand.u32 4294901760, %v2884_v27  ;;  %v1131_v40 = vand.u32 4294901760, %v1130_v32  ;;  %v1138_v41 = vand.u32 4294901760, %v1137_v33  ;;  %v2536_v53 = vpack.c.bf16 %v2884_v27, %v2882_v26 }
  0x26   :  { %2228 = vmatprep.mubr.msk.f32.mxu1 %vm2647_vm0, %v2648_v9  ;;  %v2539_v54 = vpack.c.bf16 %v1137_v33, %v1130_v32 }
  0x27   :  { %2468 = vmatpush3.bf16.msra.mxu0 %v2467_v49  ;;  %v1125_v39 = vsub.f32 %v2884_v27, %v1124_v35  ;;  %v1132_v46 = vsub.f32 %v1130_v32, %v1131_v40  ;;  %v1139_v47 = vsub.f32 %v1137_v33, %v1138_v41 }
  0x28   :  { %2474 = vmatpush3.bf16.msra.mxu1 %v2717_v17  ;;  %2475 = vmatprep.subr.bf16.mxu0 %v2646_v3 }
  0x29   :  { %2481 = vmatprep.subr.bf16.mxu1 %v2646_v3  ;;  %v1126_v45 = vand.u32 4294901760, %v1125_v39  ;;  %v1133_v50 = vand.u32 4294901760, %v1132_v46  ;;  %v1140_v51 = vand.u32 4294901760, %v1139_v47  ;;  %v1544_v46 = vlaneseq }
  0x2a   :  { %2218 = vmatmul.mubr.f32.vlgmr.msra.gmra.mrb[2].mxu0 %v122_v34  ;;  %v1117_v34 = vand.u32 4294901760, %v2882_v26 }
  0x2b   :  { %2229 = vmatmul.mubr.f32.vlgmr.msra.gmra.mrb[2].mxu1 %v123_v38  ;;  %2477 = vmatpush3.bf16.msra.mxu0 %v2476_v55  ;;  %v2533_v52 = vpack.c.bf16 %v1140_v51, %v1133_v50  ;;  %v1545_v47 = vshrl.u32 %v1544_v46, 7  ;;  %v1553_v51 = vld [vmem:[%s3001_s4] sm:$0xff] }
  0x2c   :  { %2483 = vmatpush3.bf16.msra.mxu1 %v2704_v10  ;;  %2478 = vmatprep.subr.bf16.mxu0 %v2646_v3  ;;  %v612_v10 = vsub.f32 %v2816_v62, %v611_v4  ;;  %v1118_v38 = vsub.f32 %v2882_v26, %v1117_v34  ;;  %v2548_v55 = vpack.c.bf16 %v1124_v35, %v1117_v34  ;;  %v1025_v35 = vld [vmem:[%s3000_s3 + $0x60] sm:$0x1] }
  0x2d   :  { %2484 = vmatprep.subr.bf16.mxu1 %v2646_v3  ;;  %2239 = vmatprep.mubr.msk.f32.mxu0 %vm2647_vm0, %v2648_v9 }
  0x2e   :  { %2250 = vmatprep.mubr.msk.f32.mxu1 %vm2647_vm0, %v2648_v9  ;;  %v613_v13 = vand.u32 4294901760, %v612_v10  ;;  %v1119_v44 = vand.u32 4294901760, %v1118_v38 }
  0x2f   :  { %2480 = vmatpush3.bf16.msra.mxu0 %v2479_v61 }
  0x30   :  { %2486 = vmatpush3.bf16.msra.mxu1 %v2717_v17  ;;  %2487 = vmatprep.subr.bf16.mxu0 %v2646_v3  ;;  %v2857_v17 = vld [vmem:[%s2999_s2] sm:$0x1]  ;;  %v2530_v49 = vpack.c.bf16 %v1126_v45, %v1119_v44 }
  0x31   :  { %2493 = vmatprep.subr.bf16.mxu1 %v2646_v3  ;;  %v1033_v21 = vsel %vm48_vm1, %v2857_v17, 0 }
  0x32   :  { %2240 = vmatmul.mubr.f32.vlgmr.msra.gmra.mrb[4].mxu0 %v2743_v31  ;;  %v2880_v25 = vand.u32 4294901760, %v1033_v21 }
  0x33   :  { %2251 = vmatmul.mubr.f32.vlgmr.msra.gmra.mrb[4].mxu1 %v2743_v31  ;;  %2489 = vmatpush3.bf16.msra.mxu0 %v2488_v5 }
  0x34   :  { %2495 = vmatpush3.bf16.msra.mxu1 %v2494_v6  ;;  %2490 = vmatprep.subr.bf16.mxu0 %v2646_v3  ;;  %v1105_v31 = vsub.f32 %v1033_v21, %v2880_v25 }
  0x35   :  { %2496 = vmatprep.subr.bf16.mxu1 %v2646_v3  ;;  %2261 = vmatprep.mubr.msk.f32.mxu0 %vm2647_vm0, %v2648_v9 }
  0x36   :  { %2272 = vmatprep.mubr.msk.f32.mxu1 %vm2647_vm0, %v2648_v9  ;;  %v1106_v37 = vand.u32 4294901760, %v1105_v31 }
  0x37   :  { %2492 = vmatpush3.bf16.msra.mxu0 %v2491_v11 }
  0x38   :  { %2498 = vmatpush3.bf16.msra.mxu1 %v2497_v12  ;;  %2499 = vmatprep.subr.bf16.mxu0 %v2646_v3  ;;  %v1107_v43 = vsub.f32 %v1105_v31, %v1106_v37 }
  0x39   :  { %2505 = vmatprep.subr.bf16.mxu1 %v2646_v3 }
  0x3a   :  { %2262 = vmatmul.mubr.f32.vlgmr.msra.gmra.mrb[6].mxu0 %v613_v13  ;;  %v1108_v48 = vand.u32 4294901760, %v1107_v43 }
  0x3b   :  { %2273 = vmatmul.mubr.f32.vlgmr.msra.gmra.mrb[6].mxu1 %v2798_v56  ;;  %2501 = vmatpush3.bf16.msra.mxu0 %v2500_v14 }
  0x3c   :  { %2507 = vmatpush3.bf16.msra.mxu1 %v2488_v5  ;;  %2502 = vmatprep.subr.bf16.mxu0 %v2646_v3 }
  0x3d   :  { %2508 = vmatprep.subr.bf16.mxu1 %v2646_v3  ;;  %2283 = vmatprep.mubr.msk.f32.mxu0 %vm2647_vm0, %v2648_v9 }
  0x3e   :  { %2294 = vmatprep.mubr.msk.f32.mxu1 %vm2647_vm0, %v2648_v9 }
  0x3f   :  { %2504 = vmatpush3.bf16.msra.mxu0 %v2503_v18 }
  0x40   :  { %2510 = vmatpush3.bf16.msra.mxu1 %v2491_v11  ;;  %2511 = vmatprep.subr.bf16.mxu0 %v2646_v3 }
  0x41   :  { %2517 = vmatprep.subr.bf16.mxu1 %v2646_v3 }
  0x42   :  { %2284 = vmatmul.mubr.f32.vlgmr.msra.gmra.mrb[8].mxu0 %v2816_v62 }
  0x43   :  { %2295 = vmatmul.mubr.f32.vlgmr.msra.gmra.mrb[8].mxu1 %v611_v4  ;;  %2513 = vmatpush3.bf16.msra.mxu0 %v2512_v24 }
  0x44   :  { %2519 = vmatpush3.bf16.msra.mxu1 %v2488_v5  ;;  %2514 = vmatprep.subr.bf16.mxu0 %v2646_v3 }
  0x45   :  { %2520 = vmatprep.subr.bf16.mxu1 %v2646_v3  ;;  %2305 = vmatprep.mubr.msk.f32.mxu0 %vm2647_vm0, %v2648_v9 }
  0x46   :  { %2316 = vmatprep.mubr.msk.f32.mxu1 %vm2647_vm0, %v2648_v9 }
  0x47   :  { %2516 = vmatpush3.bf16.msra.mxu0 %v2515_v30 }
  0x48   :  { %2522 = vmatpush3.bf16.msra.mxu1 %v2491_v11  ;;  %2523 = vmatprep.subr.bf16.mxu0 %v2646_v3 }
  0x49   :  { %2559 = vmatprep.subr.bf16.mxu1 %v2646_v3 }
  0x4a   :  { %2306 = vmatmul.mubr.f32.vlgmr.msra.gmra.mrb[10].mxu0 %v2798_v56 }
  0x4b   :  { %2317 = vmatmul.mubr.f32.vlgmr.msra.gmra.mrb[10].mxu1 %v2798_v56  ;;  %2525 = vmatpush3.bf16.msra.mxu0 %v2524_v36  ;;  %v2551_v56 = vpack.c.bf16 %v1138_v41, %v1131_v40 }
  0x4c   :  { %2327 = vmatprep.mubr.msk.f32.mxu0 %vm2647_vm0, %v2648_v9  ;;  %2526 = vmatprep.subr.bf16.mxu0 %v2646_v3 }
  0x4d   :  { %2393 = vmatprep.mubr.msk.f32.mxu1 %vm2647_vm0, %v2648_v9 }
  0x4f   :  { %2528 = vmatpush3.bf16.msra.mxu0 %v2527_v42 }
  0x50   :  { %2529 = vmatprep.subr.bf16.mxu0 %v2646_v3 }
  0x52   :  { %2328 = vmatmul.mubr.f32.vlgmr.msra.gmra.mrb[12].mxu0 %v1108_v48  ;;  %v1546_v48 = vsub.s32 0, %v1545_v47 }
  0x53   :  { %2531 = vmatpush3.bf16.msra.mxu0 %v2530_v49  ;;  %2338 = vmatprep.mubr.msk.f32.mxu0 %vm2647_vm0, %v2648_v9 }
  0x54   :  { %2532 = vmatprep.subr.bf16.mxu0 %v2646_v3  ;;  %v1547_v50 = vrot.slane %v2857_v17, %v1546_v48  ;;  %v1555_v17 = vld [vmem:[%s3001_s4 + $0x10] sm:$0xff] }
  0x57   :  { %2534 = vmatpush3.bf16.msra.mxu0 %v2533_v52  ;;  %v1554_v52 = vld [vmem:[%s3001_s4 + $0x8] sm:$0xff] }
  0x58   :  { %2535 = vmatprep.subr.bf16.mxu0 %v2646_v3 }
  0x5a   :  { %2339 = vmatmul.mubr.f32.vlgmr.msra.gmra.mrb[12].mxu0 %v2880_v25 }
  0x5b   :  { %2537 = vmatpush3.bf16.msra.mxu0 %v2536_v53  ;;  %2349 = vmatprep.mubr.msk.f32.mxu0 %vm2647_vm0, %v2648_v9  ;;  %v1564_v53 = vand.u32 4294901760, %v1553_v51 }
  0x5c   :  { %2538 = vmatprep.subr.bf16.mxu0 %v2646_v3 }
  0x5f   :  { %2540 = vmatpush3.bf16.msra.mxu0 %v2539_v54  ;;  %v1567_v54 = vand.u32 4294901760, %v1554_v52 }
  0x60   :  { %2541 = vmatprep.subr.bf16.mxu0 %v2646_v3 }
  0x62   :  { %2350 = vmatmul.mubr.f32.vlgmr.msra.gmra.mrb[12].mxu0 %v1105_v31  ;;  %v1031_v31 = vld [vmem:[%s3000_s3 + $0x68] sm:$0x1]  ;;  %s2651_s3 = smov 32  }
  0x63   :  { %2543 = vmatpush3.bf16.msra.mxu0 %v2524_v36  ;;  %2360 = vmatprep.mubr.msk.f32.mxu0 %vm2647_vm0, %v2648_v9 }
  0x64   :  { %2544 = vmatprep.subr.bf16.mxu0 %v2646_v3 }
  0x67   :  { %2546 = vmatpush3.bf16.msra.mxu0 %v2527_v42 }
  0x68   :  { %2547 = vmatprep.subr.bf16.mxu0 %v2646_v3 }
  0x6a   :  { %2361 = vmatmul.mubr.f32.vlgmr.msra.gmra.mrb[12].mxu0 %v1106_v37 }
  0x6b   :  { %2549 = vmatpush3.bf16.msra.mxu0 %v2548_v55  ;;  %2371 = vmatprep.mubr.msk.f32.mxu0 %vm2647_vm0, %v2648_v9  ;;  %v2952_v55 = vpack.c.bf16 %v1567_v54, %v1564_v53 }
  0x6c   :  { %2550 = vmatprep.subr.bf16.mxu0 %v2646_v3 }
  0x6d   :  { %2561 = vmatpush3.bf16.msra.mxu1 %v2952_v55 }
  0x6e   :  { %2562 = vmatprep.subr.bf16.mxu1 %v2646_v3 }
  0x6f   :  { %2552 = vmatpush3.bf16.msra.mxu0 %v2551_v56  ;;  %v1644_v56 = vsub.f32 %v1553_v51, %v1564_v53 }
  0x70   :  { %2553 = vmatprep.subr.bf16.mxu0 %v2646_v3 }
  0x72   :  { %2372 = vmatmul.mubr.f32.vlgmr.msra.gmra.mrb[12].mxu0 %v2880_v25 }
  0x73   :  { %2555 = vmatpush3.bf16.msra.mxu0 %v2524_v36  ;;  %2382 = vmatprep.mubr.msk.f32.mxu0 %vm2647_vm0, %v2648_v9 }
  0x74   :  { %2556 = vmatprep.subr.bf16.mxu0 %v2646_v3 }
  0x77   :  { %2558 = vmatpush3.bf16.msra.mxu0 %v2527_v42 }
  0x7a   :  { %2383 = vmatmul.mubr.f32.vlgmr.msra.gmra.mrb[12].mxu0 %v2880_v25 }
  0xf5   :  { %v127_v57 = vpop.f32.mrb[0].mxu0 }
  0xf6   :  { %v218_v58 = vpop.f32.mrb[0].mxu1  ;;  %v2197_v59 = vpop.f32.mrb[1].mxu0 }
  0xf7   :  { %v219_v60 = vadd.f32 %v218_v58, %v127_v57  ;;  %v2208_v61 = vpop.f32.mrb[1].mxu1  ;;  %v1651_v57 = vsub.f32 %v1554_v52, %v1567_v54  ;;  %v1556_v58 = vld [vmem:[%s3001_s4 + $0x18] sm:$0xff] }
  0xf8   :  { %v1573_v61 = vand.u32 4294901760, %v1556_v58 }
  0xfd   :  { %v298_v62 = vpop.f32.mrb[2].mxu0 }
  0xfe   :  { %v375_v63 = vpop.f32.mrb[2].mxu1  ;;  %v299_v0 = vadd.f32 %v298_v62, %v219_v60  ;;  %v2219_v1 = vpop.f32.mrb[3].mxu0  ;;  %v1570_v60 = vand.u32 4294901760, %v1555_v17  ;;  %v1645_v62 = vand.u32 4294901760, %v1644_v56 }
  0xff   :  { %v2230_v2 = vpop.f32.mrb[3].mxu1 }
 0x100   :  { %v376_v4 = vadd.f32 %v375_v63, %v299_v0  ;;  %v1652_v63 = vand.u32 4294901760, %v1651_v57  ;;  %v2962_v0 = vpack.c.bf16 %v1573_v61, %v1570_v60  ;;  %v1658_v1 = vsub.f32 %v1555_v17, %v1570_v60 }
 0x101   :  { %v1665_v2 = vsub.f32 %v1556_v58, %v1573_v61 }
 0x102   :  { %2564 = vmatpush3.bf16.msra.mxu1 %v2962_v0 }
 0x103   :  { %2565 = vmatprep.subr.bf16.mxu1 %v2646_v3 }
 0x105   :  { %v458_v5 = vpop.f32.mrb[4].mxu0 }
 0x106   :  { %v533_v6 = vpop.f32.mrb[4].mxu1  ;;  %v459_v7 = vadd.f32 %v458_v5, %v376_v4  ;;  %v2241_v8 = vpop.f32.mrb[5].mxu0  ;;  %v1646_v4 = vsub.f32 %v1644_v56, %v1645_v62 }
 0x107   :  { %v2252_v10 = vpop.f32.mrb[5].mxu1 }
 0x108   :  { %v534_v11 = vadd.f32 %v533_v6, %v459_v7  ;;  %v1653_v6 = vsub.f32 %v1651_v57, %v1652_v63  ;;  %v1647_v8 = vand.u32 4294901760, %v1646_v4  ;;  %v1659_v10 = vand.u32 4294901760, %v1658_v1 }
 0x10d   :  { %v615_v12 = vpop.f32.mrb[6].mxu0 }
 0x10e   :  { %v706_v13 = vpop.f32.mrb[6].mxu1  ;;  %v616_v14 = vadd.f32 %v615_v12, %v534_v11  ;;  %v2263_v15 = vpop.f32.mrb[7].mxu0  ;;  %v1666_v11 = vand.u32 4294901760, %v1665_v2 }
 0x10f   :  { %v2274_v16 = vpop.f32.mrb[7].mxu1  ;;  %v1660_v15 = vsub.f32 %v1658_v1, %v1659_v10 }
 0x110   :  { %v707_v18 = vadd.f32 %v706_v13, %v616_v14  ;;  %v1654_v14 = vand.u32 4294901760, %v1653_v6  ;;  %v1667_v16 = vsub.f32 %v1665_v2, %v1666_v11 }
 0x115   :  { %v786_v19 = vpop.f32.mrb[8].mxu0 }
 0x116   :  { %v863_v20 = vpop.f32.mrb[8].mxu1  ;;  %v787_v21 = vadd.f32 %v786_v19, %v707_v18  ;;  %v2285_v22 = vpop.f32.mrb[9].mxu0  ;;  %v2566_v19 = vpack.c.bf16 %v1654_v14, %v1647_v8 }
 0x117   :  { %v2296_v23 = vpop.f32.mrb[9].mxu1 }
 0x118   :  { %v864_v24 = vadd.f32 %v863_v20, %v787_v21  ;;  %v1661_v20 = vand.u32 4294901760, %v1660_v15  ;;  %v1668_v21 = vand.u32 4294901760, %v1667_v16  ;;  %v2572_v23 = vpack.c.bf16 %v1651_v57, %v1644_v56 }
 0x11a   :  { %v2569_v22 = vpack.c.bf16 %v1668_v21, %v1661_v20 }
 0x11d   :  { %v946_v25 = vpop.f32.mrb[10].mxu0 }
 0x11e   :  { %v1021_v26 = vpop.f32.mrb[10].mxu1  ;;  %v947_v27 = vadd.f32 %v946_v25, %v864_v24  ;;  %v2307_v28 = vpop.f32.mrb[11].mxu0  ;;  %v2575_v24 = vpack.c.bf16 %v1665_v2, %v1658_v1  ;;  %v2584_v25 = vpack.c.bf16 %v1652_v63, %v1645_v62 }
 0x11f   :  { %v2318_v29 = vpop.f32.mrb[11].mxu1 }
 0x120   :  { %v1022_v30 = vadd.f32 %v1021_v26, %v947_v27  ;;  %v2587_v26 = vpack.c.bf16 %v1666_v11, %v1659_v10 }
 0x122   :  { %v1026_v36 = vadd.f32 %v1025_v35, %v1022_v30  ;;  %v1557_v35 = vld [vmem:[%s3001_s4 + $0x20] sm:$0x1] }
 0x14d   :  { %v1516_v32 = vpop.f32.mrb[12].mxu0 }
 0x14e   :  { %v2595_v33 = vadd.f32 %v1516_v32, %v1031_v31  ;;  %v2384_v34 = vpop.f32.mrb[13].mxu0 }
 0x150   :  { %1528 = vrot.lane.b32.xlu0 %v2595_v33, %s2649_s30  ;;  %v1520_v37 = vadd.f32 %v2595_v33, %v1026_v36 }
 0x152   :  { %v2066_v38 = vmul.f32 -1.442695, %v1520_v37 }
 0x154   :  { %2625 = vpow2.f32 %v2066_v38 }
 0x15e   :  { %v2626_v39 = vpop.eup %2625 }
 0x15f   :  { %v1524_v40 = vadd.f32 1.0, %v2626_v39 }
 0x161   :  { %2627 = vrcp.f32 %v1524_v40 }
 0x16b   :  { %v2628_v41 = vpop.eup %2627 }
 0x16c   :  { %v1538_v5 = vsub.f32 1.0, %v2628_v41 }
 0x1c2   :  { %v1529_v42 = vpop.permute.xlu0 %1528 }
 0x1c3   :  { %v1531_v43 = vmul.f32 %v2628_v41, %v1529_v42 }
 0x1c5   :  { %1533 = vrot.lane.b32.xlu0 %v1531_v43, %s2649_s30 }
 0x237   :  { %v1534_v44 = vpop.permute.xlu0 %1533 }
 0x238   :  { %v1536_v45 = vadd.f32 %v1534_v44, %v1026_v36 }
 0x23a   :  { %2629 = vtanh.f32 %v1536_v45 }
 0x244   :  { %v2630_v49 = vpop.eup %2629 }
 0x245   :  { %1540 = vrot.lane.b32.xlu1 %v2630_v49, %s2650_s8 }
 0x249   :  { %1548 = vrot.lane.b32.xlu1 %v1547_v50, %s2651_s3 }
 0x2b7   :  { %v1541_v59 = vpop.permute.xlu1 %1540 }
 0x2b8   :  { %v1543_v12 = vmul.f32 %v1541_v59, %v1538_v5 }
 0x2bb   :  { %v1549_v7 = vpop.permute.xlu1 %1548 }
 0x2bc   :  { %v1551_v13 = vmul.f32 %v2628_v41, %v1549_v7 }
 0x2be   :  { %v1552_v18 = vadd.f32 %v1551_v13, %v1543_v12 }
 0x2c0   :  { %2048 = vrot.lane.b32.xlu1 %v1552_v18, %s2652_s17  ;;  %1559 = vrot.lane.b32.xlu0 %v1552_v18, %s2650_s8 }
 0x332   :  { %v1560_v27 = vpop.permute.xlu0 %1559  ;;  %v2049_v34 = vpop.permute.xlu1 %2048 }
 0x333   :  { %v1561_v28 = vsel %vm48_vm1, %v1560_v27, 0  ;;  %v2052_v37 = vsel %vm2051_vm2, 0.0, %v2049_v34 }
 0x334   :  { %v1632_v29 = vand.u32 4294901760, %v1561_v28  ;;  %v2054_v41 = vsel %vm2053_vm3, %v2052_v37, 0.0 }
 0x336   :  { %v1633_v30 = vsub.f32 %v1561_v28, %v1632_v29 }
 0x338   :  { %v1634_v31 = vand.u32 4294901760, %v1633_v30 }
 0x33a   :  { %v1635_v32 = vsub.f32 %v1633_v30, %v1634_v31 }
 0x33c   :  { %v1636_v33 = vand.u32 4294901760, %v1635_v32 }
 0x33e   :  { %2394 = vmatmul.mubr.f32.vlgmr.msra.gmra.mrb[12].mxu1 %v1636_v33 }
 0x33f   :  { %2567 = vmatpush3.bf16.msra.mxu1 %v2566_v19  ;;  %2404 = vmatprep.mubr.msk.f32.mxu1 %vm2647_vm0, %v2648_v9 }
 0x340   :  { %2568 = vmatprep.subr.bf16.mxu1 %v2646_v3 }
 0x343   :  { %2570 = vmatpush3.bf16.msra.mxu1 %v2569_v22 }
 0x344   :  { %2571 = vmatprep.subr.bf16.mxu1 %v2646_v3 }
 0x346   :  { %2405 = vmatmul.mubr.f32.vlgmr.msra.gmra.mrb[12].mxu1 %v1632_v29 }
 0x347   :  { %2573 = vmatpush3.bf16.msra.mxu1 %v2572_v23  ;;  %2415 = vmatprep.mubr.msk.f32.mxu1 %vm2647_vm0, %v2648_v9 }
 0x348   :  { %2574 = vmatprep.subr.bf16.mxu1 %v2646_v3 }
 0x34b   :  { %2576 = vmatpush3.bf16.msra.mxu1 %v2575_v24 }
 0x34c   :  { %2577 = vmatprep.subr.bf16.mxu1 %v2646_v3 }
 0x34e   :  { %2416 = vmatmul.mubr.f32.vlgmr.msra.gmra.mrb[12].mxu1 %v1633_v30 }
 0x34f   :  { %2579 = vmatpush3.bf16.msra.mxu1 %v2952_v55  ;;  %2426 = vmatprep.mubr.msk.f32.mxu1 %vm2647_vm0, %v2648_v9 }
 0x350   :  { %2580 = vmatprep.subr.bf16.mxu1 %v2646_v3 }
 0x353   :  { %2582 = vmatpush3.bf16.msra.mxu1 %v2962_v0 }
 0x354   :  { %2583 = vmatprep.subr.bf16.mxu1 %v2646_v3 }
 0x356   :  { %2427 = vmatmul.mubr.f32.vlgmr.msra.gmra.mrb[12].mxu1 %v1634_v31 }
 0x357   :  { %2585 = vmatpush3.bf16.msra.mxu1 %v2584_v25  ;;  %2437 = vmatprep.mubr.msk.f32.mxu1 %vm2647_vm0, %v2648_v9 }
 0x358   :  { %2586 = vmatprep.subr.bf16.mxu1 %v2646_v3 }
 0x35b   :  { %2588 = vmatpush3.bf16.msra.mxu1 %v2587_v26 }
 0x35c   :  { %2589 = vmatprep.subr.bf16.mxu1 %v2646_v3 }
 0x35e   :  { %2438 = vmatmul.mubr.f32.vlgmr.msra.gmra.mrb[12].mxu1 %v1632_v29 }
 0x35f   :  { %2591 = vmatpush3.bf16.msra.mxu1 %v2952_v55  ;;  %2448 = vmatprep.mubr.msk.f32.mxu1 %vm2647_vm0, %v2648_v9 }
 0x360   :  { %2592 = vmatprep.subr.bf16.mxu1 %v2646_v3 }
 0x363   :  { %2594 = vmatpush3.bf16.msra.mxu1 %v2962_v0 }
 0x366   :  { %2449 = vmatmul.mubr.f32.vlgmr.msra.gmra.mrb[12].mxu1 %v1632_v29 }
 0x439   :  { %v2044_v36 = vpop.f32.mrb[12].mxu1 }
 0x43a   :  { %v2596_v38 = vadd.f32 %v2044_v36, %v1557_v35  ;;  %v2450_v39 = vpop.f32.mrb[13].mxu1 }
 0x43c   :  { %v2055_v40 = vmax.f32 %v2596_v38, 0.0 }
 0x43e   :  { %v2056_v42 = vadd.f32 %v2055_v40, %v2054_v41 }
 0x440   :  { %2057 = vst [vmem:[%s3002_s5] sm:$0x1] %v2056_v42 }
 0x441   :  { %2062 = vsyncpa [#allocation3], 1 }

</bundles_post_ra>
